<compile_context>
chip_gen: v6e
topology: v6e:2x2x1
jax: 0.10.0
libtpu: 0.0.40
codegen_flags: <defaults>
</compile_context>

<pallas_src>
import math

import jax
import jax.numpy as jnp
from jax import lax
from jax.experimental import pallas as pl
from jax.experimental.pallas import tpu as pltpu

_VMEM = pl.BlockSpec(memory_space=pltpu.MemorySpace.VMEM)


# ----------------------------------------------------------------------------
# Fused text kernel: bidirectional GRU (pack_padded semantics) + PIENet + l2norm
# ----------------------------------------------------------------------------
def _text_kernel(x_ref, valid_ref,
                 wx_ref, bx_ref, wh_ref, bh_ref,
                 w1_ref, w2_ref, fcw_ref, fcb_ref, lng_ref, lnb_ref,
                 out_ref, attn_ref, res_ref,
                 gi_ref):
    L, B, D = x_ref.shape
    H2 = wh_ref.shape[0]          # 2H  (== embed_size)
    H = H2 // 2
    G = 3 * H                     # gates per direction

    x = x_ref[...]                                   # (L, B, D) time-major
    valid = valid_ref[...]                           # (L, B, 1), 1.0 where t < length

    # ---- GRU input projection hoisted out of the recurrence (both directions
    #      at once, all time steps) into a (L, B, 6H) VMEM scratch.
    gi_all = jnp.einsum('lbd,dg->lbg', x, wx_ref[...],
                        preferred_element_type=jnp.float32) + bx_ref[...]
    gi_ref[...] = gi_all

    wh = wh_ref[...]                                 # (2H, 6H) block-diag [Whf|0 ; 0|Whb]
    bh = jnp.broadcast_to(bh_ref[...], (B, 2 * G))   # hoisted broadcast

    def gate(gi, gh, h):                             # PyTorch gate order r, z, n
        r = jax.nn.sigmoid(gi[:, :H] + gh[:, :H])
        z = jax.nn.sigmoid(gi[:, H:2 * H] + gh[:, H:2 * H])
        n = jnp.tanh(gi[:, 2 * H:] + r * gh[:, 2 * H:])
        return (1.0 - z) * n + z * h

    def body(i, hcat):                               # one fwd + one bwd step per iter
        j = L - 1 - i
        gi_f = gi_ref[i][:, :G]                      # leading-axis reads (cheap)
        gi_b = gi_ref[j][:, G:]
        gh = jnp.dot(hcat, wh, preferred_element_type=jnp.float32) + bh   # (B, 6H)
        hf_new = gate(gi_f, gh[:, :G], hcat[:, :H])
        hb_new = gate(gi_b, gh[:, G:], hcat[:, H:])
        v_f = valid_ref[i]                           # (B, 1) — skip padded steps
        v_b = valid_ref[j]
        hf = v_f * hf_new + (1.0 - v_f) * hcat[:, :H]
        hb = v_b * hb_new + (1.0 - v_b) * hcat[:, H:]
        return jnp.concatenate([hf, hb], axis=-1)

    h0 = jnp.zeros((B, H2), jnp.float32)
    rnn_out = lax.fori_loop(0, L, body, h0, unroll=True)   # (B, 2H) = [h_f | h_b]

    # ---- PIENet attention (n_head = num_embeds = 1): w2(tanh(w1(x)))
    h1 = jnp.tanh(jnp.einsum('lbd,dh->lbh', x, w1_ref[...],
                             preferred_element_type=jnp.float32))
    a = jnp.einsum('lbh,hk->lbk', h1, w2_ref[...],
                   preferred_element_type=jnp.float32)      # (L, B, 1)
    # masked softmax over the sequence axis; large-negative (not -inf) for safety
    a = a + (valid - 1.0) * 1e30
    a = a - jnp.max(a, axis=0, keepdims=True)
    e = jnp.exp(a)
    a = e / jnp.sum(e, axis=0, keepdims=True)
    attn_ref[...] = a
    pooled = jnp.sum(a * x, axis=0)                  # (B, D) == bmm(attn^T, x).squeeze(1)

    # residual = dropout(sigmoid(fc(residual))) ; dropout == identity (eval)
    res = jax.nn.sigmoid(
        jnp.dot(pooled, fcw_ref[...], preferred_element_type=jnp.float32)
        + fcb_ref[...])
    res_ref[...] = res

    o = rnn_out + res                                # out + residual
    mu = jnp.mean(o, axis=-1, keepdims=True)
    var = jnp.mean(jnp.square(o - mu), axis=-1, keepdims=True)
    o = (o - mu) * lax.rsqrt(var + 1e-5) * lng_ref[...] + lnb_ref[...]    # LayerNorm
    o = o * lax.rsqrt(jnp.sum(o * o, axis=-1, keepdims=True) + 1e-12)     # l2norm (+eps)
    out_ref[...] = o


def encode_text(spoken_ids, cap_lengths, p):
    # TODO(synk): pretrained BERT last_hidden_state is replaced by a deterministic
    # embedding-table lookup of the same (B, L, word_dim) shape.
    wemb = p["bert_emb"][spoken_ids]                 # (B, L, word_dim); dropout == identity
    B, L, D = wemb.shape
    H = p["gru_wh_f"].shape[0]

    x_lbd = jnp.transpose(wemb, (1, 0, 2))           # time-major for the GRU loop
    lengths = cap_lengths.astype(jnp.int32)
    # validity / pad mask built once (shared by GRU masking and attention softmax)
    valid = (jnp.arange(L)[:, None] < lengths[None, :]).astype(jnp.float32)[..., None]

    # combined GRU weights: input projection [Wx_f | Wx_b], block-diag recurrent
    wx = jnp.concatenate([p["gru_wx_f"], p["gru_wx_b"]], axis=1)          # (D, 6H)
    bx = jnp.concatenate([p["gru_bx_f"], p["gru_bx_b"]], axis=1)          # (1, 6H)
    zeros = jnp.zeros((H, 3 * H), jnp.float32)
    wh = jnp.concatenate([
        jnp.concatenate([p["gru_wh_f"], zeros], axis=1),
        jnp.concatenate([zeros, p["gru_wh_b"]], axis=1)], axis=0)         # (2H, 6H)
    bh = jnp.concatenate([p["gru_bh_f"], p["gru_bh_b"]], axis=1)          # (1, 6H)

    out, attn_lb1, residual = pl.pallas_call(
        _text_kernel,
        out_shape=(jax.ShapeDtypeStruct((B, 2 * H), jnp.float32),
                   jax.ShapeDtypeStruct((L, B, 1), jnp.float32),
                   jax.ShapeDtypeStruct((B, 2 * H), jnp.float32)),
        in_specs=[_VMEM] * 12,
        out_specs=(_VMEM, _VMEM, _VMEM),
        scratch_shapes=[pltpu.VMEM((L, B, 6 * H), jnp.float32)],
    )(x_lbd, valid, wx, bx, wh, bh,
      p["pie_w1"], p["pie_w2"], p["pie_fcw"], p["pie_fcb"],
      p["pie_lng"], p["pie_lnb"])

    attn = jnp.transpose(attn_lb1, (1, 0, 2))        # (B, L, 1) — PIENet attn layout
    # opt.order not set -> no torch.abs
    return out, attn, residual


# ----------------------------------------------------------------------------
# ViLT stand-in (patch embed + transformer block + CLS pooler), all-2D matmuls
# ----------------------------------------------------------------------------
def vilt_pooler(input_ids, pixel_values, p, lang_mask, img_mask):
    if lang_mask:
        input_ids = input_ids * 0
    if img_mask:
        pixel_values = pixel_values * 0
    if pixel_values.ndim < 4:                         # mirrors the .dim() < 4 branch
        input_ids = input_ids[None]
        pixel_values = pixel_values[None]

    B, C, Hi, Wi = pixel_values.shape
    ph = p["patch"]
    nH, nW = Hi // ph, Wi // ph
    Np = nH * nW
    T = input_ids.shape[1]
    Dm = p["vilt_wq"].shape[0]
    S = 1 + T + Np

    # NCHW -> (B*Np, C*ph*pw) patch rows (glue reshape, outside the kernel)
    patches = pixel_values.reshape(B, C, nH, ph, nW, ph)
    patches = patches.transpose(0, 2, 4, 1, 3, 5).reshape(B * Np, C * ph * ph)
    # TODO(synk): exact pretrained 'dandelin/vilt-b32-mlm-itm' (12 layers, real
    # weights) cannot be loaded in-script; deterministic single-block stand-in
    # exposing the same pooler_output interface.
    txt2 = p["vilt_tok_emb"][input_ids].reshape(B * T, Dm)   # embedding gather (glue)
    cls2 = p["vilt_cls"].reshape(1, Dm)
    scale = 1.0 / math.sqrt(Dm)

    def kernel(txt_ref, patch_ref, cls_ref, wpatch_ref,
               wq_ref, wk_ref, wv_ref, wo_ref,
               ln1g_ref, ln1b_ref, w1_ref, b1_ref, w2_ref, b2_ref,
               ln2g_ref, ln2b_ref, wp_ref, bp_ref,
               out_ref, seq_ref):

        def ln(v, g, b):
            mu = jnp.mean(v, axis=-1, keepdims=True)
            var = jnp.mean(jnp.square(v - mu), axis=-1, keepdims=True)
            return (v - mu) * lax.rsqrt(var + 1e-5) * g + b

        # single 2D patch-projection matmul for all batches
        img2 = jnp.dot(patch_ref[...], wpatch_ref[...],
                       preferred_element_type=jnp.float32)          # (B*Np, Dm)

        # assemble [CLS | text tokens | image patches] by static slice-writes
        for b in range(B):
            r0 = b * S
            seq_ref[r0:r0 + 1, :] = cls_ref[...]
            seq_ref[r0 + 1:r0 + 1 + T, :] = txt_ref[b * T:(b + 1) * T, :]
            seq_ref[r0 + 1 + T:r0 + S, :] = img2[b * Np:(b + 1) * Np, :]
        x2 = seq_ref[...]                                            # (B*S, Dm)

        # q/k/v/o projections as single 2D MXU matmuls over the whole token slab
        q2 = jnp.dot(x2, wq_ref[...], preferred_element_type=jnp.float32)
        k2 = jnp.dot(x2, wk_ref[...], preferred_element_type=jnp.float32)
        v2 = jnp.dot(x2, wv_ref[...], preferred_element_type=jnp.float32)

        att_rows = []
        for b in range(B):                          # true batched contraction per sample
            r0, r1 = b * S, (b + 1) * S
            qb, kb, vb = q2[r0:r1, :], k2[r0:r1, :], v2[r0:r1, :]
            sb = jnp.einsum('qd,kd->qk', qb, kb,
                            preferred_element_type=jnp.float32) * scale
            sb = sb - jnp.max(sb, axis=-1, keepdims=True)
            eb = jnp.exp(sb)
            pb = eb / jnp.sum(eb, axis=-1, keepdims=True)
            att_rows.append(jnp.dot(pb, vb, preferred_element_type=jnp.float32))
        att2 = jnp.concatenate(att_rows, axis=0)                     # (B*S, Dm)
        att2 = jnp.dot(att2, wo_ref[...], preferred_element_type=jnp.float32)

        x2 = ln(x2 + att2, ln1g_ref[...], ln1b_ref[...])
        h = jax.nn.gelu(jnp.dot(x2, w1_ref[...], preferred_element_type=jnp.float32)
                        + b1_ref[...])
        h = jnp.dot(h, w2_ref[...], preferred_element_type=jnp.float32) + b2_ref[...]
        x2 = ln(x2 + h, ln2g_ref[...], ln2b_ref[...])

        # ViLT pooler: tanh(dense(first token))
        cls_out = jnp.concatenate([x2[b * S:b * S + 1, :] for b in range(B)], axis=0)
        out_ref[...] = jnp.tanh(
            jnp.dot(cls_out, wp_ref[...], preferred_element_type=jnp.float32)
            + bp_ref[...])

    return pl.pallas_call(
        kernel,
        out_shape=jax.ShapeDtypeStruct((B, Dm), jnp.float32),
        in_specs=[_VMEM] * 18,
        out_specs=_VMEM,
        scratch_shapes=[pltpu.VMEM((B * S, Dm), jnp.float32)],
    )(txt2, patches, cls2, p["vilt_wpatch"],
      p["vilt_wq"], p["vilt_wk"], p["vilt_wv"], p["vilt_wo"],
      p["vilt_ln1g"], p["vilt_ln1b"], p["vilt_w1"], p["vilt_b1"],
      p["vilt_w2"], p["vilt_b2"], p["vilt_ln2g"], p["vilt_ln2b"],
      p["vilt_wp"], p["vilt_bp"])


# ----------------------------------------------------------------------------
# Ours_VILT.forward
# ----------------------------------------------------------------------------
def ours_vilt_forward(fig_ocr, spoken_output, pointer_target, cap_lengths, p,
                      lang_mask=False, img_mask=False):
    del pointer_target  # unused by the PyTorch forward as well
    fig_emb = vilt_pooler(fig_ocr["input_ids"], fig_ocr["pixel_values"], p,
                          lang_mask, img_mask)
    txt_emb, txt_attn, txt_residual = encode_text(spoken_output, cap_lengths, p)
    return fig_emb, txt_emb, txt_attn, txt_residual


# ----------------------------------------------------------------------------
# Deterministic parameter init (synthetic weights, shapes from the module)
# ----------------------------------------------------------------------------
def init_params(key, *, word_dim=32, embed_size=32, d_h=16, vocab=100,
                vilt_dim=32, vilt_vocab=64, patch=8, img_c=3, num_embeds=1):
    H = embed_size // 2
    keys = iter(jax.random.split(key, 64))

    def xavier(k, shape):
        a = math.sqrt(6.0 / (shape[0] + shape[-1]))
        return jax.random.uniform(k, shape, jnp.float32, -a, a)

    p = {}
    p["bert_emb"] = jax.random.normal(next(keys), (vocab, word_dim), jnp.float32) * 0.1
    for d in ("f", "b"):  # bidirectional GRU weights (stored transposed: in x out)
        p[f"gru_wx_{d}"] = xavier(next(keys), (word_dim, 3 * H))
        p[f"gru_wh_{d}"] = xavier(next(keys), (H, 3 * H))
        p[f"gru_bx_{d}"] = jnp.zeros((1, 3 * H), jnp.float32)
        p[f"gru_bh_{d}"] = jnp.zeros((1, 3 * H), jnp.float32)
    # PIENet / MultiHeadSelfAttention
    p["pie_w1"] = xavier(next(keys), (word_dim, d_h))
    p["pie_w2"] = xavier(next(keys), (d_h, num_embeds))
    p["pie_fcw"] = xavier(next(keys), (word_dim, embed_size))
    p["pie_fcb"] = jnp.zeros((1, embed_size), jnp.float32)
    p["pie_lng"] = jnp.ones((1, embed_size), jnp.float32)
    p["pie_lnb"] = jnp.zeros((1, embed_size), jnp.float32)
    # ViLT stand-in
    p["patch"] = patch
    p["vilt_tok_emb"] = jax.random.normal(next(keys), (vilt_vocab, vilt_dim), jnp.float32) * 0.1
    p["vilt_cls"] = jax.random.normal(next(keys), (1, 1, vilt_dim), jnp.float32) * 0.1
    p["vilt_wpatch"] = xavier(next(keys), (img_c * patch * patch, vilt_dim))
    for n in ("wq", "wk", "wv", "wo", "wp"):
        p[f"vilt_{n}"] = xavier(next(keys), (vilt_dim, vilt_dim))
    p["vilt_ln1g"] = jnp.ones((1, vilt_dim), jnp.float32)
    p["vilt_ln1b"] = jnp.zeros((1, vilt_dim), jnp.float32)
    p["vilt_w1"] = xavier(next(keys), (vilt_dim, 4 * vilt_dim))
    p["vilt_b1"] = jnp.zeros((1, 4 * vilt_dim), jnp.float32)
    p["vilt_w2"] = xavier(next(keys), (4 * vilt_dim, vilt_dim))
    p["vilt_b2"] = jnp.zeros((1, vilt_dim), jnp.float32)
    p["vilt_ln2g"] = jnp.ones((1, vilt_dim), jnp.float32)
    p["vilt_ln2b"] = jnp.zeros((1, vilt_dim), jnp.float32)
    p["vilt_bp"] = jnp.zeros((1, vilt_dim), jnp.float32)
    return p


if __name__ == "__main__":
    key = jax.random.PRNGKey(0)
    k_p, k_ids, k_pix, k_fig = jax.random.split(key, 4)

    B = 2
    L = 8             # spoken caption length
    word_dim = 32     # BERT-hidden stand-in
    embed_size = 32
    T_fig = 11        # OCR tokens -> CLS + 11 text + 4 patches = 16 ViLT tokens

    params = init_params(k_p, word_dim=word_dim, embed_size=embed_size,
                         d_h=word_dim // 2, vocab=100, vilt_dim=32,
                         vilt_vocab=64, patch=8, img_c=3, num_embeds=1)

    spoken_output = jax.random.randint(k_ids, (B, L), 0, 100)
    cap_lengths = jnp.array([8, 5], dtype=jnp.int32)
    fig_ocr = {
        "input_ids": jax.random.randint(k_fig, (B, T_fig), 0, 64),
        "pixel_values": jax.random.normal(k_pix, (B, 3, 16, 16), jnp.float32),
    }
    pointer_target = jnp.zeros((B,), jnp.int32)   # unused by forward (as in PyTorch)

    fig_emb, txt_emb, txt_attn, txt_residual = ours_vilt_forward(
        fig_ocr, spoken_output, pointer_target, cap_lengths, params,
        lang_mask=False, img_mask=False)
    jax.block_until_ready((fig_emb, txt_emb, txt_attn, txt_residual))

    assert fig_emb.shape == (B, 32)
    assert txt_emb.shape == (B, embed_size)
    assert txt_attn.shape == (B, L, 1)
    assert txt_residual.shape == (B, embed_size)
    print("KERNEL_OK")
</pallas_src>

<mosaic_0001>
module attributes {stable_mosaic.version = 11 : i64} {
  func.func @kernel(%arg0: memref<22x32xf32, #tpu.memory_space<vmem>>, %arg1: memref<8x192xf32, #tpu.memory_space<vmem>>, %arg2: memref<1x32xf32, #tpu.memory_space<vmem>>, %arg3: memref<192x32xf32, #tpu.memory_space<vmem>>, %arg4: memref<32x32xf32, #tpu.memory_space<vmem>>, %arg5: memref<32x32xf32, #tpu.memory_space<vmem>>, %arg6: memref<32x32xf32, #tpu.memory_space<vmem>>, %arg7: memref<32x32xf32, #tpu.memory_space<vmem>>, %arg8: memref<1x32xf32, #tpu.memory_space<vmem>>, %arg9: memref<1x32xf32, #tpu.memory_space<vmem>>, %arg10: memref<32x128xf32, #tpu.memory_space<vmem>>, %arg11: memref<1x128xf32, #tpu.memory_space<vmem>>, %arg12: memref<128x32xf32, #tpu.memory_space<vmem>>, %arg13: memref<1x32xf32, #tpu.memory_space<vmem>>, %arg14: memref<1x32xf32, #tpu.memory_space<vmem>>, %arg15: memref<1x32xf32, #tpu.memory_space<vmem>>, %arg16: memref<32x32xf32, #tpu.memory_space<vmem>>, %arg17: memref<1x32xf32, #tpu.memory_space<vmem>>, %arg18: memref<2x32xf32, #tpu.memory_space<vmem>>, %arg19: memref<32x32xf32, #tpu.memory_space<vmem>>) attributes {dimension_semantics = [], scalar_prefetch = 0 : i64, scratch_operands = 1 : i64, tpu.core_type = #tpu.core_type<tc>} {
    %c0 = arith.constant 0 : index
    %c0_0 = arith.constant 0 : index
    %0 = vector.load %arg1[%c0, %c0_0] : memref<8x192xf32, #tpu.memory_space<vmem>>, vector<8x192xf32>
    %c0_1 = arith.constant 0 : index
    %c0_2 = arith.constant 0 : index
    %1 = vector.load %arg3[%c0_1, %c0_2] : memref<192x32xf32, #tpu.memory_space<vmem>>, vector<192x32xf32>
    %cst = arith.constant dense<0.000000e+00> : vector<8x32xf32>
    %2 = tpu.matmul %0, %1, %cst {dimension_numbers = #tpu.dot_dimension_numbers<[1], [0], [0], [1], [0, 0, 1, 1], [], []>} : vector<8x192xf32>, vector<192x32xf32>, vector<8x32xf32> -> vector<8x32xf32>
    %c0_3 = arith.constant 0 : index
    %c0_4 = arith.constant 0 : index
    %3 = vector.load %arg2[%c0_3, %c0_4] : memref<1x32xf32, #tpu.memory_space<vmem>>, vector<1x32xf32>
    %c0_5 = arith.constant 0 : index
    %c0_6 = arith.constant 0 : index
    %4 = vector.load %arg19[%c0_5, %c0_6] : memref<32x32xf32, #tpu.memory_space<vmem>>, vector<1x32xf32>
    tpu.vector_store %arg19[%c0_5, %c0_6], %3 {strides = array<i32>} : memref<32x32xf32, #tpu.memory_space<vmem>>, vector<1x32xf32>,
    %c0_7 = arith.constant 0 : index
    %c0_8 = arith.constant 0 : index
    %5 = vector.load %arg0[%c0_7, %c0_8] : memref<22x32xf32, #tpu.memory_space<vmem>>, vector<11x32xf32>
    %c1 = arith.constant 1 : index
    %c0_9 = arith.constant 0 : index
    %6 = vector.load %arg19[%c1, %c0_9] : memref<32x32xf32, #tpu.memory_space<vmem>>, vector<11x32xf32>
    tpu.vector_store %arg19[%c1, %c0_9], %5 {strides = array<i32>} : memref<32x32xf32, #tpu.memory_space<vmem>>, vector<11x32xf32>,
    %7 = vector.extract_strided_slice %2 {offsets = [0, 0], sizes = [4, 32], strides = [1, 1]} : vector<8x32xf32> to vector<4x32xf32>
    %c12 = arith.constant 12 : index
    %c0_10 = arith.constant 0 : index
    %8 = vector.load %arg19[%c12, %c0_10] : memref<32x32xf32, #tpu.memory_space<vmem>>, vector<4x32xf32>
    tpu.vector_store %arg19[%c12, %c0_10], %7 {strides = array<i32>} : memref<32x32xf32, #tpu.memory_space<vmem>>, vector<4x32xf32>,
    %c0_11 = arith.constant 0 : index
    %c0_12 = arith.constant 0 : index
    %9 = vector.load %arg2[%c0_11, %c0_12] : memref<1x32xf32, #tpu.memory_space<vmem>>, vector<1x32xf32>
    %c16 = arith.constant 16 : index
    %c0_13 = arith.constant 0 : index
    %10 = vector.load %arg19[%c16, %c0_13] : memref<32x32xf32, #tpu.memory_space<vmem>>, vector<1x32xf32>
    tpu.vector_store %arg19[%c16, %c0_13], %9 {strides = array<i32>} : memref<32x32xf32, #tpu.memory_space<vmem>>, vector<1x32xf32>,
    %c11 = arith.constant 11 : index
    %c0_14 = arith.constant 0 : index
    %11 = vector.load %arg0[%c11, %c0_14] : memref<22x32xf32, #tpu.memory_space<vmem>>, vector<11x32xf32>
    %c17 = arith.constant 17 : index
    %c0_15 = arith.constant 0 : index
    %12 = vector.load %arg19[%c17, %c0_15] : memref<32x32xf32, #tpu.memory_space<vmem>>, vector<11x32xf32>
    tpu.vector_store %arg19[%c17, %c0_15], %11 {strides = array<i32>} : memref<32x32xf32, #tpu.memory_space<vmem>>, vector<11x32xf32>,
    %13 = vector.extract_strided_slice %2 {offsets = [4, 0], sizes = [4, 32], strides = [1, 1]} : vector<8x32xf32> to vector<4x32xf32>
    %c28 = arith.constant 28 : index
    %c0_16 = arith.constant 0 : index
    %14 = vector.load %arg19[%c28, %c0_16] : memref<32x32xf32, #tpu.memory_space<vmem>>, vector<4x32xf32>
    tpu.vector_store %arg19[%c28, %c0_16], %13 {strides = array<i32>} : memref<32x32xf32, #tpu.memory_space<vmem>>, vector<4x32xf32>,
    %c0_17 = arith.constant 0 : index
    %c0_18 = arith.constant 0 : index
    %15 = vector.load %arg19[%c0_17, %c0_18] : memref<32x32xf32, #tpu.memory_space<vmem>>, vector<32x32xf32>
    %c0_19 = arith.constant 0 : index
    %c0_20 = arith.constant 0 : index
    %16 = vector.load %arg4[%c0_19, %c0_20] : memref<32x32xf32, #tpu.memory_space<vmem>>, vector<32x32xf32>
    %cst_21 = arith.constant dense<0.000000e+00> : vector<32x32xf32>
    %17 = tpu.matmul %15, %16, %cst_21 {dimension_numbers = #tpu.dot_dimension_numbers<[1], [0], [0], [1], [0, 0, 1, 1], [], []>} : vector<32x32xf32>, vector<32x32xf32>, vector<32x32xf32> -> vector<32x32xf32>
    %c0_22 = arith.constant 0 : index
    %c0_23 = arith.constant 0 : index
    %18 = vector.load %arg5[%c0_22, %c0_23] : memref<32x32xf32, #tpu.memory_space<vmem>>, vector<32x32xf32>
    %cst_24 = arith.constant dense<0.000000e+00> : vector<32x32xf32>
    %19 = tpu.matmul %15, %18, %cst_24 {dimension_numbers = #tpu.dot_dimension_numbers<[1], [0], [0], [1], [0, 0, 1, 1], [], []>} : vector<32x32xf32>, vector<32x32xf32>, vector<32x32xf32> -> vector<32x32xf32>
    %c0_25 = arith.constant 0 : index
    %c0_26 = arith.constant 0 : index
    %20 = vector.load %arg6[%c0_25, %c0_26] : memref<32x32xf32, #tpu.memory_space<vmem>>, vector<32x32xf32>
    %cst_27 = arith.constant dense<0.000000e+00> : vector<32x32xf32>
    %21 = tpu.matmul %15, %20, %cst_27 {dimension_numbers = #tpu.dot_dimension_numbers<[1], [0], [0], [1], [0, 0, 1, 1], [], []>} : vector<32x32xf32>, vector<32x32xf32>, vector<32x32xf32> -> vector<32x32xf32>
    %22 = vector.extract_strided_slice %17 {offsets = [0, 0], sizes = [16, 32], strides = [1, 1]} : vector<32x32xf32> to vector<16x32xf32>
    %23 = vector.extract_strided_slice %19 {offsets = [0, 0], sizes = [16, 32], strides = [1, 1]} : vector<32x32xf32> to vector<16x32xf32>
    %24 = vector.extract_strided_slice %21 {offsets = [0, 0], sizes = [16, 32], strides = [1, 1]} : vector<32x32xf32> to vector<16x32xf32>
    "tpu.trace_start"() <{level = 10 : i32, message = "qd,kd->qk"}> : () -> ()
    %cst_28 = arith.constant dense<0.000000e+00> : vector<16x16xf32>
    %25 = tpu.matmul %22, %23, %cst_28 {dimension_numbers = #tpu.dot_dimension_numbers<[1], [1], [0], [0], [0, 0, 1, 0], [], []>} : vector<16x32xf32>, vector<16x32xf32>, vector<16x16xf32> -> vector<16x16xf32>
    "tpu.trace_stop"() : () -> ()
    %cst_29 = arith.constant 0.176776692 : f32
    %26 = vector.broadcast %cst_29 : f32 to vector<16x16xf32>
    %27 = arith.mulf %25, %26 : vector<16x16xf32>
    %cst_30 = arith.constant dense<0xFF800000> : vector<16xf32>
    %28 = vector.multi_reduction <maximumf>, %27, %cst_30 [1] : vector<16x16xf32> to vector<16xf32>
    %29 = vector.shape_cast %28 : vector<16xf32> to vector<16x1xf32>
    %30 = vector.broadcast %29 : vector<16x1xf32> to vector<16x16xf32>
    %31 = arith.subf %27, %30 : vector<16x16xf32>
    %32 = math.exp %31 : vector<16x16xf32>
    %cst_31 = arith.constant dense<0.000000e+00> : vector<16xf32>
    %33 = vector.multi_reduction <add>, %32, %cst_31 [1] : vector<16x16xf32> to vector<16xf32>
    %34 = vector.shape_cast %33 : vector<16xf32> to vector<16x1xf32>
    %35 = vector.broadcast %34 : vector<16x1xf32> to vector<16x16xf32>
    %36 = arith.divf %32, %35 : vector<16x16xf32>
    %cst_32 = arith.constant dense<0.000000e+00> : vector<16x32xf32>
    %37 = tpu.matmul %36, %24, %cst_32 {dimension_numbers = #tpu.dot_dimension_numbers<[1], [0], [0], [1], [0, 0, 1, 1], [], []>} : vector<16x16xf32>, vector<16x32xf32>, vector<16x32xf32> -> vector<16x32xf32>
    %38 = vector.extract_strided_slice %17 {offsets = [16, 0], sizes = [16, 32], strides = [1, 1]} : vector<32x32xf32> to vector<16x32xf32>
    %39 = vector.extract_strided_slice %19 {offsets = [16, 0], sizes = [16, 32], strides = [1, 1]} : vector<32x32xf32> to vector<16x32xf32>
    %40 = vector.extract_strided_slice %21 {offsets = [16, 0], sizes = [16, 32], strides = [1, 1]} : vector<32x32xf32> to vector<16x32xf32>
    "tpu.trace_start"() <{level = 10 : i32, message = "qd,kd->qk"}> : () -> ()
    %cst_33 = arith.constant dense<0.000000e+00> : vector<16x16xf32>
    %41 = tpu.matmul %38, %39, %cst_33 {dimension_numbers = #tpu.dot_dimension_numbers<[1], [1], [0], [0], [0, 0, 1, 0], [], []>} : vector<16x32xf32>, vector<16x32xf32>, vector<16x16xf32> -> vector<16x16xf32>
    "tpu.trace_stop"() : () -> ()
    %cst_34 = arith.constant 0.176776692 : f32
    %42 = vector.broadcast %cst_34 : f32 to vector<16x16xf32>
    %43 = arith.mulf %41, %42 : vector<16x16xf32>
    %cst_35 = arith.constant dense<0xFF800000> : vector<16xf32>
    %44 = vector.multi_reduction <maximumf>, %43, %cst_35 [1] : vector<16x16xf32> to vector<16xf32>
    %45 = vector.shape_cast %44 : vector<16xf32> to vector<16x1xf32>
    %46 = vector.broadcast %45 : vector<16x1xf32> to vector<16x16xf32>
    %47 = arith.subf %43, %46 : vector<16x16xf32>
    %48 = math.exp %47 : vector<16x16xf32>
    %cst_36 = arith.constant dense<0.000000e+00> : vector<16xf32>
    %49 = vector.multi_reduction <add>, %48, %cst_36 [1] : vector<16x16xf32> to vector<16xf32>
    %50 = vector.shape_cast %49 : vector<16xf32> to vector<16x1xf32>
    %51 = vector.broadcast %50 : vector<16x1xf32> to vector<16x16xf32>
    %52 = arith.divf %48, %51 : vector<16x16xf32>
    %cst_37 = arith.constant dense<0.000000e+00> : vector<16x32xf32>
    %53 = tpu.matmul %52, %40, %cst_37 {dimension_numbers = #tpu.dot_dimension_numbers<[1], [0], [0], [1], [0, 0, 1, 1], [], []>} : vector<16x16xf32>, vector<16x32xf32>, vector<16x32xf32> -> vector<16x32xf32>
    %54 = tpu.concatenate %37, %53 in 0 : vector<16x32xf32>, vector<16x32xf32> -> vector<32x32xf32>
    %c0_38 = arith.constant 0 : index
    %c0_39 = arith.constant 0 : index
    %55 = vector.load %arg7[%c0_38, %c0_39] : memref<32x32xf32, #tpu.memory_space<vmem>>, vector<32x32xf32>
    %cst_40 = arith.constant dense<0.000000e+00> : vector<32x32xf32>
    %56 = tpu.matmul %54, %55, %cst_40 {dimension_numbers = #tpu.dot_dimension_numbers<[1], [0], [0], [1], [0, 0, 1, 1], [], []>} : vector<32x32xf32>, vector<32x32xf32>, vector<32x32xf32> -> vector<32x32xf32>
    %57 = arith.addf %15, %56 : vector<32x32xf32>
    %c0_41 = arith.constant 0 : index
    %c0_42 = arith.constant 0 : index
    %58 = vector.load %arg8[%c0_41, %c0_42] : memref<1x32xf32, #tpu.memory_space<vmem>>, vector<1x32xf32>
    %c0_43 = arith.constant 0 : index
    %c0_44 = arith.constant 0 : index
    %59 = vector.load %arg9[%c0_43, %c0_44] : memref<1x32xf32, #tpu.memory_space<vmem>>, vector<1x32xf32>
    %cst_45 = arith.constant dense<0.000000e+00> : vector<32xf32>
    %60 = vector.multi_reduction <add>, %57, %cst_45 [1] : vector<32x32xf32> to vector<32xf32>
    %61 = vector.shape_cast %60 : vector<32xf32> to vector<32x1xf32>
    %cst_46 = arith.constant 3.200000e+01 : f32
    %62 = vector.broadcast %cst_46 : f32 to vector<32x1xf32>
    %63 = arith.divf %61, %62 : vector<32x1xf32>
    %64 = vector.broadcast %63 : vector<32x1xf32> to vector<32x32xf32>
    %65 = arith.subf %57, %64 : vector<32x32xf32>
    %66 = arith.mulf %65, %65 : vector<32x32xf32>
    %cst_47 = arith.constant dense<0.000000e+00> : vector<32xf32>
    %67 = vector.multi_reduction <add>, %66, %cst_47 [1] : vector<32x32xf32> to vector<32xf32>
    %68 = vector.shape_cast %67 : vector<32xf32> to vector<32x1xf32>
    %cst_48 = arith.constant 3.200000e+01 : f32
    %69 = vector.broadcast %cst_48 : f32 to vector<32x1xf32>
    %70 = arith.divf %68, %69 : vector<32x1xf32>
    %71 = vector.broadcast %63 : vector<32x1xf32> to vector<32x32xf32>
    %72 = arith.subf %57, %71 : vector<32x32xf32>
    %cst_49 = arith.constant 9.99999974E-6 : f32
    %73 = vector.broadcast %cst_49 : f32 to vector<32x1xf32>
    %74 = arith.addf %70, %73 : vector<32x1xf32>
    %75 = math.rsqrt %74 : vector<32x1xf32>
    %76 = vector.broadcast %75 : vector<32x1xf32> to vector<32x32xf32>
    %77 = arith.mulf %72, %76 : vector<32x32xf32>
    %78 = vector.broadcast %58 : vector<1x32xf32> to vector<32x32xf32>
    %79 = arith.mulf %77, %78 : vector<32x32xf32>
    %80 = vector.broadcast %59 : vector<1x32xf32> to vector<32x32xf32>
    %81 = arith.addf %79, %80 : vector<32x32xf32>
    %c0_50 = arith.constant 0 : index
    %c0_51 = arith.constant 0 : index
    %82 = vector.load %arg10[%c0_50, %c0_51] : memref<32x128xf32, #tpu.memory_space<vmem>>, vector<32x128xf32>
    %cst_52 = arith.constant dense<0.000000e+00> : vector<32x128xf32>
    %83 = tpu.matmul %81, %82, %cst_52 {dimension_numbers = #tpu.dot_dimension_numbers<[1], [0], [0], [1], [0, 0, 1, 1], [], []>} : vector<32x32xf32>, vector<32x128xf32>, vector<32x128xf32> -> vector<32x128xf32>
    %c0_53 = arith.constant 0 : index
    %c0_54 = arith.constant 0 : index
    %84 = vector.load %arg11[%c0_53, %c0_54] : memref<1x128xf32, #tpu.memory_space<vmem>>, vector<1x128xf32>
    %85 = vector.broadcast %84 : vector<1x128xf32> to vector<32x128xf32>
    %86 = arith.addf %83, %85 : vector<32x128xf32>
    %87 = arith.mulf %86, %86 : vector<32x128xf32>
    %88 = arith.mulf %86, %87 : vector<32x128xf32>
    %cst_55 = arith.constant 4.471500e-02 : f32
    %89 = vector.broadcast %cst_55 : f32 to vector<32x128xf32>
    %90 = arith.mulf %89, %88 : vector<32x128xf32>
    %91 = arith.addf %86, %90 : vector<32x128xf32>
    %cst_56 = arith.constant 0.797884583 : f32
    %92 = vector.broadcast %cst_56 : f32 to vector<32x128xf32>
    %93 = arith.mulf %92, %91 : vector<32x128xf32>
    %94 = math.tanh %93 : vector<32x128xf32>
    %cst_57 = arith.constant 1.000000e+00 : f32
    %95 = vector.broadcast %cst_57 : f32 to vector<32x128xf32>
    %96 = arith.addf %95, %94 : vector<32x128xf32>
    %cst_58 = arith.constant 5.000000e-01 : f32
    %97 = vector.broadcast %cst_58 : f32 to vector<32x128xf32>
    %98 = arith.mulf %97, %96 : vector<32x128xf32>
    %99 = arith.mulf %86, %98 : vector<32x128xf32>
    %c0_59 = arith.constant 0 : index
    %c0_60 = arith.constant 0 : index
    %100 = vector.load %arg12[%c0_59, %c0_60] : memref<128x32xf32, #tpu.memory_space<vmem>>, vector<128x32xf32>
    %cst_61 = arith.constant dense<0.000000e+00> : vector<32x32xf32>
    %101 = tpu.matmul %99, %100, %cst_61 {dimension_numbers = #tpu.dot_dimension_numbers<[1], [0], [0], [1], [0, 0, 1, 1], [], []>} : vector<32x128xf32>, vector<128x32xf32>, vector<32x32xf32> -> vector<32x32xf32>
    %c0_62 = arith.constant 0 : index
    %c0_63 = arith.constant 0 : index
    %102 = vector.load %arg13[%c0_62, %c0_63] : memref<1x32xf32, #tpu.memory_space<vmem>>, vector<1x32xf32>
    %103 = vector.broadcast %102 : vector<1x32xf32> to vector<32x32xf32>
    %104 = arith.addf %101, %103 : vector<32x32xf32>
    %105 = arith.addf %81, %104 : vector<32x32xf32>
    %c0_64 = arith.constant 0 : index
    %c0_65 = arith.constant 0 : index
    %106 = vector.load %arg14[%c0_64, %c0_65] : memref<1x32xf32, #tpu.memory_space<vmem>>, vector<1x32xf32>
    %c0_66 = arith.constant 0 : index
    %c0_67 = arith.constant 0 : index
    %107 = vector.load %arg15[%c0_66, %c0_67] : memref<1x32xf32, #tpu.memory_space<vmem>>, vector<1x32xf32>
    %cst_68 = arith.constant dense<0.000000e+00> : vector<32xf32>
    %108 = vector.multi_reduction <add>, %105, %cst_68 [1] : vector<32x32xf32> to vector<32xf32>
    %109 = vector.shape_cast %108 : vector<32xf32> to vector<32x1xf32>
    %cst_69 = arith.constant 3.200000e+01 : f32
    %110 = vector.broadcast %cst_69 : f32 to vector<32x1xf32>
    %111 = arith.divf %109, %110 : vector<32x1xf32>
    %112 = vector.broadcast %111 : vector<32x1xf32> to vector<32x32xf32>
    %113 = arith.subf %105, %112 : vector<32x32xf32>
    %114 = arith.mulf %113, %113 : vector<32x32xf32>
    %cst_70 = arith.constant dense<0.000000e+00> : vector<32xf32>
    %115 = vector.multi_reduction <add>, %114, %cst_70 [1] : vector<32x32xf32> to vector<32xf32>
    %116 = vector.shape_cast %115 : vector<32xf32> to vector<32x1xf32>
    %cst_71 = arith.constant 3.200000e+01 : f32
    %117 = vector.broadcast %cst_71 : f32 to vector<32x1xf32>
    %118 = arith.divf %116, %117 : vector<32x1xf32>
    %119 = vector.broadcast %111 : vector<32x1xf32> to vector<32x32xf32>
    %120 = arith.subf %105, %119 : vector<32x32xf32>
    %cst_72 = arith.constant 9.99999974E-6 : f32
    %121 = vector.broadcast %cst_72 : f32 to vector<32x1xf32>
    %122 = arith.addf %118, %121 : vector<32x1xf32>
    %123 = math.rsqrt %122 : vector<32x1xf32>
    %124 = vector.broadcast %123 : vector<32x1xf32> to vector<32x32xf32>
    %125 = arith.mulf %120, %124 : vector<32x32xf32>
    %126 = vector.broadcast %106 : vector<1x32xf32> to vector<32x32xf32>
    %127 = arith.mulf %125, %126 : vector<32x32xf32>
    %128 = vector.broadcast %107 : vector<1x32xf32> to vector<32x32xf32>
    %129 = arith.addf %127, %128 : vector<32x32xf32>
    %130 = vector.extract_strided_slice %129 {offsets = [0, 0], sizes = [1, 32], strides = [1, 1]} : vector<32x32xf32> to vector<1x32xf32>
    %131 = vector.extract_strided_slice %129 {offsets = [16, 0], sizes = [1, 32], strides = [1, 1]} : vector<32x32xf32> to vector<1x32xf32>
    %132 = tpu.concatenate %130, %131 in 0 : vector<1x32xf32>, vector<1x32xf32> -> vector<2x32xf32>
    %c0_73 = arith.constant 0 : index
    %c0_74 = arith.constant 0 : index
    %133 = vector.load %arg16[%c0_73, %c0_74] : memref<32x32xf32, #tpu.memory_space<vmem>>, vector<32x32xf32>
    %cst_75 = arith.constant dense<0.000000e+00> : vector<2x32xf32>
    %134 = tpu.matmul %132, %133, %cst_75 {dimension_numbers = #tpu.dot_dimension_numbers<[1], [0], [0], [1], [0, 0, 1, 1], [], []>} : vector<2x32xf32>, vector<32x32xf32>, vector<2x32xf32> -> vector<2x32xf32>
    %c0_76 = arith.constant 0 : index
    %c0_77 = arith.constant 0 : index
    %135 = vector.load %arg17[%c0_76, %c0_77] : memref<1x32xf32, #tpu.memory_space<vmem>>, vector<1x32xf32>
    %136 = vector.broadcast %135 : vector<1x32xf32> to vector<2x32xf32>
    %137 = arith.addf %134, %136 : vector<2x32xf32>
    %138 = math.tanh %137 : vector<2x32xf32>
    %c0_78 = arith.constant 0 : index
    %c0_79 = arith.constant 0 : index
    %139 = vector.load %arg18[%c0_78, %c0_79] : memref<2x32xf32, #tpu.memory_space<vmem>>, vector<2x32xf32>
    tpu.vector_store %arg18[%c0_78, %c0_79], %138 {strides = array<i32>} : memref<2x32xf32, #tpu.memory_space<vmem>>, vector<2x32xf32>,
    return
  }
}

</mosaic_0001>

<bundles_post_ra>
// kernel: tpu_custom_call.1
= control target key start
LH: loop header
LB: loop body
LE: loop exit
PB: predicated region body
PF: predicated region fallthrough
CT: control target
= control target key end

     0   :  { %s2243_s0 = inlined_call_operand.vmem [shape: f32[22,32], index: 0, kind: input, shape index: {}]   ;;  %s2244_s1 = inlined_call_operand.vmem [shape: f32[8,192], index: 1, kind: input, shape index: {}]   ;;  %s2245_s2 = inlined_call_operand.vmem [shape: f32[1,32], index: 2, kind: input, shape index: {}]   ;;  %s2246_s3 = inlined_call_operand.vmem [shape: f32[192,32], index: 3, kind: input, shape index: {}]   ;;  %s2247_s4 = inlined_call_operand.vmem [shape: f32[32,32], index: 4, kind: input, shape index: {}]   ;;  %s2248_s5 = inlined_call_operand.vmem [shape: f32[32,32], index: 5, kind: input, shape index: {}]   ;;  %s2249_s6 = inlined_call_operand.vmem [shape: f32[32,32], index: 6, kind: input, shape index: {}]   ;;  %s2250_s7 = inlined_call_operand.vmem [shape: f32[32,32], index: 7, kind: input, shape index: {}]   ;;  %s2251_s8 = inlined_call_operand.vmem [shape: f32[1,32], index: 8, kind: input, shape index: {}]   ;;  %s2252_s9 = inlined_call_operand.vmem [shape: f32[1,32], index: 9, kind: input, shape index: {}]   ;;  %s2253_s10 = inlined_call_operand.vmem [shape: f32[32,128], index: 10, kind: input, shape index: {}]   ;;  %s2254_s11 = inlined_call_operand.vmem [shape: f32[1,128], index: 11, kind: input, shape index: {}]   ;;  %s2255_s12 = inlined_call_operand.vmem [shape: f32[128,32], index: 12, kind: input, shape index: {}]   ;;  %s2256_s13 = inlined_call_operand.vmem [shape: f32[1,32], index: 13, kind: input, shape index: {}]   ;;  %s2257_s14 = inlined_call_operand.vmem [shape: f32[1,32], index: 14, kind: input, shape index: {}]   ;;  %s2258_s15 = inlined_call_operand.vmem [shape: f32[1,32], index: 15, kind: input, shape index: {}]   ;;  %s2259_s16 = inlined_call_operand.vmem [shape: f32[32,32], index: 16, kind: input, shape index: {}]   ;;  %s2260_s17 = inlined_call_operand.vmem [shape: f32[1,32], index: 17, kind: input, shape index: {}]   ;;  %s2261_s18 = inlined_call_operand.hbm [shape: f32[2,32], index: 18, kind: output, shape index: {}]  }
   0x1   :  { %2265 = sst [smem:[#allocation6_spill]] %s2243_s0 }
   0x2   :  { %2266 = sst [smem:[#allocation7_spill]] %s2244_s1 }
   0x3   :  { %2267 = sst [smem:[#allocation8_spill]] %s2245_s2 }
   0x4   :  { %v77_v0 = vld [vmem:[%s2246_s3 + $0x78] sm:$0xff]  ;;  %v1761_v1 = vmov 0.0   ;;  %v76_v2 = vld [vmem:[%s2246_s3 + $0x70] sm:$0xff]  ;;  %v75_v3 = vld [vmem:[%s2246_s3 + $0x68] sm:$0xff]  ;;  %vm86_vm0 = vcmask 523264   ;;  %s2268_s24 = sld [smem:[#allocation7_spill]] }
   0x5   :  { %90 = vmatprep.subr.mxu0 %v1761_v1  ;;  %v74_v4 = vld [vmem:[%s2246_s3 + $0x60] sm:$0xff]  ;;  %v73_v5 = vld [vmem:[%s2246_s3 + $0x58] sm:$0xff] }
   0x6   :  { %91 = vmatpush1.msra.mxu0 %v77_v0 }
   0x7   :  { %92 = vmatprep.subr.mxu0 %v1761_v1 }
   0x8   :  { %93 = vmatpush1.msra.mxu0 %v76_v2 }
   0x9   :  { %94 = vmatprep.subr.mxu0 %v1761_v1 }
   0xa   :  { %95 = vmatpush1.msra.mxu0 %v75_v3  ;;  %v61_v6 = vld [vmem:[%s2268_s24 + $0x8] sm:$0xff] }
   0xb   :  { %96 = vmatprep.subr.mxu0 %v1761_v1 }
   0xc   :  { %97 = vmatpush1.msra.mxu0 %v74_v4 }
   0xd   :  { %23 = vsyncpa [#allocation4], 0  ;;  %98 = vmatprep.subr.mxu0 %v1761_v1  ;;  %v72_v7 = vld [vmem:[%s2246_s3 + $0x50] sm:$0xff]  ;;  %1429 = vmatprep.mubr.msk.f32.mxu0 %vm86_vm0, %v61_v6  ;;  %v71_v8 = vld [vmem:[%s2246_s3 + $0x48] sm:$0xff]  ;;  %s2269_s25 = sld [smem:[#allocation8_spill]]  ;;  %vm161_vm1 = vcmask 253952  }
   0xe   :  { %99 = vmatpush1.msra.mxu0 %v73_v5  ;;  %v70_v9 = vld [vmem:[%s2246_s3 + $0x40] sm:$0xff]  ;;  %v69_v10 = vld [vmem:[%s2246_s3 + $0x38] sm:$0xff]  ;;  %v68_v11 = vld [vmem:[%s2246_s3 + $0x30] sm:$0xff]  ;;  %s2270_s28 = sld [smem:[#allocation6_spill]]  ;;  %vm165_vm2 = vcmask 261120   ;;  %vm167_vm3 = vcmask 256000  }
   0xf   :  { %100 = vmatprep.subr.mxu0 %v1761_v1  ;;  %v67_v12 = vld [vmem:[%s2246_s3 + $0x28] sm:$0xff]  ;;  %v66_v13 = vld [vmem:[%s2246_s3 + $0x20] sm:$0xff]  ;;  %v65_v14 = vld [vmem:[%s2246_s3 + $0x18] sm:$0xff]  ;;  %vm169_vm4 = vcmask 257024   ;;  %vm177_vm5 = vcmask 261124   ;;  %vm551_vm6 = vcmask 130048  }
  0x10   :  { %101 = vmatpush1.msra.mxu0 %v72_v7  ;;  %v64_v15 = vld [vmem:[%s2246_s3 + $0x10] sm:$0xff]  ;;  %v63_v16 = vld [vmem:[%s2246_s3 + $0x8] sm:$0xff]  ;;  %v62_v17 = vld [vmem:[%s2246_s3] sm:$0xff]  ;;  %vm1762_vm7 = vmmov 0   ;;  %vm1326_vm8 = vcmask 1040384   ;;  %vm1413_vm9 = vcmask 254976  }
  0x11   :  { %102 = vmatprep.subr.mxu0 %v1761_v1  ;;  %v85_v18 = vld [vmem:[%s2246_s3 + $0xb8] sm:$0xff]  ;;  %v84_v19 = vld [vmem:[%s2246_s3 + $0xb0] sm:$0xff]  ;;  %v83_v20 = vld [vmem:[%s2246_s3 + $0xa8] sm:$0xff] }
  0x12   :  { %103 = vmatpush1.msra.mxu0 %v71_v8  ;;  %v82_v21 = vld [vmem:[%s2246_s3 + $0xa0] sm:$0xff]  ;;  %v81_v22 = vld [vmem:[%s2246_s3 + $0x98] sm:$0xff]  ;;  %v80_v23 = vld [vmem:[%s2246_s3 + $0x90] sm:$0xff] }
  0x13   :  { %104 = vmatprep.subr.mxu0 %v1761_v1  ;;  %v79_v24 = vld [vmem:[%s2246_s3 + $0x88] sm:$0xff]  ;;  %v78_v25 = vld [vmem:[%s2246_s3 + $0x80] sm:$0xff]  ;;  %v186_v29 = vld [vmem:[%s2247_s4 + $0x18] sm:$0xff] }
  0x14   :  { %105 = vmatpush1.msra.mxu0 %v70_v9  ;;  %v60_v26 = vld [vmem:[%s2268_s24] sm:$0xff]  ;;  %v164_v30 = vld [vmem:[%s2270_s28 + $0x8] sm:$0x7]  ;;  %1551 = vmatprep.subr.mxu1 %v186_v29  ;;  %v173_v31 = vld [vmem:[%s2270_s28 + $0xb] sm:$0xff] }
  0x15   :  { %106 = vmatprep.subr.mxu0 %v1761_v1  ;;  %v160_v27 = vld [vmem:[%s2269_s25] sm:$0x1]  ;;  %168 = vst.msk [vmem:[#allocation2 + $0x9] sm:$0x7] %vm167_vm3, %v164_v30  ;;  %v174_v32 = vld [vmem:[%s2270_s28 + $0x13] sm:$0x7]  ;;  %1552 = vmatpush3.msra.mxu1 %v186_v29 }
  0x16   :  { %107 = vmatpush1.msra.mxu0 %v69_v10  ;;  %v163_v28 = vld [vmem:[%s2270_s28] sm:$0xff]  ;;  %162 = vst.msk [vmem:[#allocation2] sm:$0x1] %vm161_vm1, %v160_v27  ;;  %v185_v33 = vld [vmem:[%s2247_s4 + $0x10] sm:$0xff]  ;;  %v184_v34 = vld [vmem:[%s2247_s4 + $0x8] sm:$0xff] }
  0x17   :  { %108 = vmatprep.subr.mxu0 %v1761_v1  ;;  %166 = vst.msk [vmem:[#allocation2 + $0x1] sm:$0xff] %vm165_vm2, %v163_v28  ;;  %175 = vst.msk [vmem:[#allocation2 + $0x11] sm:$0xff] %vm165_vm2, %v173_v31  ;;  %1553 = vmatprep.subr.mxu1 %v185_v33  ;;  %v171_v35 = vld [vmem:[%s2269_s25] sm:$0x1]  ;;  %v287_v38 = vld [vmem:[%s2248_s5 + $0x18] sm:$0xff] }
  0x18   :  { %109 = vmatpush1.msra.mxu0 %v68_v11  ;;  %176 = vst.msk [vmem:[#allocation2 + $0x19] sm:$0x7] %vm167_vm3, %v174_v32  ;;  %1554 = vmatpush3.msra.mxu1 %v185_v33  ;;  %v183_v36 = vld [vmem:[%s2247_s4] sm:$0xff]  ;;  %v286_v43 = vld [vmem:[%s2248_s5 + $0x10] sm:$0xff]  ;;  %v285_v44 = vld [vmem:[%s2248_s5 + $0x8] sm:$0xff] }
  0x19   :  { %110 = vmatprep.subr.mxu0 %v1761_v1  ;;  %172 = vst.msk [vmem:[#allocation2 + $0x10] sm:$0x1] %vm161_vm1, %v171_v35  ;;  %1555 = vmatprep.subr.mxu1 %v184_v34  ;;  %v284_v46 = vld [vmem:[%s2248_s5] sm:$0xff]  ;;  %v376_v47 = vld [vmem:[%s2249_s6 + $0x18] sm:$0xff]  ;;  %v375_v48 = vld [vmem:[%s2249_s6 + $0x10] sm:$0xff] }
  0x1a   :  { %111 = vmatpush1.msra.mxu0 %v67_v12  ;;  %1556 = vmatpush3.msra.mxu1 %v184_v34  ;;  %v374_v49 = vld [vmem:[%s2249_s6 + $0x8] sm:$0xff]  ;;  %v373_v50 = vld [vmem:[%s2249_s6] sm:$0xff] }
  0x1b   :  { %112 = vmatprep.subr.mxu0 %v1761_v1  ;;  %1557 = vmatprep.subr.mxu1 %v183_v36 }
  0x1c   :  { %113 = vmatpush1.msra.mxu0 %v66_v13  ;;  %1558 = vmatpush3.msra.mxu1 %v183_v36 }
  0x1d   :  { %114 = vmatprep.subr.mxu0 %v1761_v1  ;;  %1565 = vmatprep.subr.mxu1 %v287_v38 }
  0x1e   :  { %115 = vmatpush1.msra.mxu0 %v65_v14  ;;  %v1995_v37 = vld [vmem:[#allocation2] sm:$0xff] }
  0x1f   :  { %116 = vmatprep.subr.mxu0 %v1761_v1  ;;  %1559 = vmatprep.mubr.msk.f32.mxu1 %vm165_vm2, %v1995_v37 }
  0x20   :  { %117 = vmatpush1.msra.mxu0 %v64_v15  ;;  %v2002_v41 = vld [vmem:[#allocation2 + $0x10] sm:$0xff] }
  0x21   :  { %118 = vmatprep.subr.mxu0 %v1761_v1 }
  0x22   :  { %119 = vmatpush1.msra.mxu0 %v63_v16 }
  0x23   :  { %120 = vmatprep.subr.mxu0 %v1761_v1 }
  0x24   :  { %121 = vmatpush1.msra.mxu0 %v62_v17 }
  0x25   :  { %138 = vmatprep.subr.mxu0 %v1761_v1 }
  0x26   :  { %139 = vmatpush2.msra.mxu0 %v85_v18 }
  0x27   :  { %140 = vmatprep.subr.mxu0 %v1761_v1 }
  0x28   :  { %141 = vmatpush2.msra.mxu0 %v84_v19 }
  0x29   :  { %142 = vmatprep.subr.mxu0 %v1761_v1 }
  0x2a   :  { %143 = vmatpush2.msra.mxu0 %v83_v20 }
  0x2b   :  { %144 = vmatprep.subr.mxu0 %v1761_v1 }
  0x2c   :  { %145 = vmatpush2.msra.mxu0 %v82_v21 }
  0x2d   :  { %146 = vmatprep.subr.mxu0 %v1761_v1 }
  0x2e   :  { %147 = vmatpush2.msra.mxu0 %v81_v22 }
  0x2f   :  { %148 = vmatprep.subr.mxu0 %v1761_v1 }
  0x30   :  { %149 = vmatpush2.msra.mxu0 %v80_v23 }
  0x31   :  { %150 = vmatprep.subr.mxu0 %v1761_v1 }
  0x32   :  { %151 = vmatpush2.msra.mxu0 %v79_v24 }
  0x33   :  { %152 = vmatprep.subr.mxu0 %v1761_v1 }
  0x34   :  { %153 = vmatpush2.msra.mxu0 %v78_v25 }
  0x35   :  { %155 = vmatmul.mubr.f32.vlgmr.msra.gmra.mxu0 %v60_v26 }
  0xf5   :  { %v156_v39 = vpop.f32.mrf.mxu0 }
  0xf6   :  { %170 = vst.msk [vmem:[#allocation2 + $0xc] sm:$0xf] %vm169_vm4, %v156_v39 }
  0xf7   :  { %178 = vst.msk [vmem:[#allocation2 + $0x18] sm:$0xf0] %vm177_vm5, %v156_v39  ;;  %v158_v40 = vpop.f32.mrf.mxu0 }
  0xfd   :  { %v2004_v42 = vld [vmem:[#allocation2 + $0x8] sm:$0xff] }
  0xfe   :  { %1560 = vmatmul.mubr.msk.f32.vlgmr.msra.gmra.mxu1 %vm165_vm2, %v2004_v42  ;;  %v2016_v45 = vld [vmem:[#allocation2 + $0x18] sm:$0xff] }
  0xff   :  { %1566 = vmatpush3.msra.mxu1 %v287_v38  ;;  %1562 = vmatprep.mubr.msk.f32.mxu1 %vm165_vm2, %v2002_v41 }
 0x100   :  { %1567 = vmatprep.subr.mxu1 %v286_v43 }
 0x101   :  { %1568 = vmatpush3.msra.mxu1 %v286_v43  ;;  %v850_v43 = vld [vmem:[%s2250_s7 + $0x18] sm:$0xff] }
 0x102   :  { %1563 = vmatmul.mubr.msk.f32.gmra.mxu1 %vm165_vm2, %v2016_v45  ;;  %1569 = vmatprep.subr.mxu1 %v285_v44 }
 0x103   :  { %1570 = vmatpush3.msra.mxu1 %v285_v44  ;;  %1573 = vmatprep.mubr.msk.f32.mxu1 %vm165_vm2, %v1995_v37 }
 0x104   :  { %1571 = vmatprep.subr.mxu1 %v284_v46 }
 0x105   :  { %1572 = vmatpush3.msra.mxu1 %v284_v46 }
 0x106   :  { %1574 = vmatmul.mubr.msk.f32.vlgmr.msra.gmra.mxu1 %vm165_vm2, %v2004_v42  ;;  %1579 = vmatprep.subr.mxu1 %v376_v47 }
 0x107   :  { %1580 = vmatpush3.msra.mxu1 %v376_v47  ;;  %1576 = vmatprep.mubr.msk.f32.mxu1 %vm165_vm2, %v2002_v41 }
 0x108   :  { %1581 = vmatprep.subr.mxu1 %v375_v48 }
 0x109   :  { %1582 = vmatpush3.msra.mxu1 %v375_v48 }
 0x10a   :  { %1577 = vmatmul.mubr.msk.f32.gmra.mxu1 %vm165_vm2, %v2016_v45  ;;  %1583 = vmatprep.subr.mxu1 %v374_v49 }
 0x10b   :  { %1584 = vmatpush3.msra.mxu1 %v374_v49  ;;  %1587 = vmatprep.mubr.msk.f32.mxu1 %vm165_vm2, %v1995_v37 }
 0x10c   :  { %1585 = vmatprep.subr.mxu1 %v373_v50 }
 0x10d   :  { %1586 = vmatpush3.msra.mxu1 %v373_v50 }
 0x10e   :  { %1588 = vmatmul.mubr.msk.f32.vlgmr.msra.gmra.mxu1 %vm165_vm2, %v2004_v42 }
 0x10f   :  { %1590 = vmatprep.mubr.msk.f32.mxu1 %vm165_vm2, %v2002_v41 }
 0x112   :  { %1591 = vmatmul.mubr.msk.f32.gmra.mxu1 %vm165_vm2, %v2016_v45 }
 0x1be   :  { %v1561_v51 = vpop.f32.mrf.mxu1 }
 0x1c0   :  { %v265_v52 = vpop.f32.mrf.mxu1 }
 0x1c1   :  { %1597 = vmatprep.mubr.msk.f32.mxu1 %vm165_vm2, %v265_v52  ;;  %v848_v52 = vld [vmem:[%s2250_s7 + $0x8] sm:$0xff] }
 0x1c2   :  { %v1564_v53 = vpop.f32.mrf.mxu1 }
 0x1c4   :  { %v275_v54 = vpop.f32.mrf.mxu1 }
 0x1c6   :  { %v1575_v55 = vpop.f32.mrf.mxu1 }
 0x1c7   :  { %1593 = vmatprep.subr.msk.mxu1 %vm165_vm2, %v1575_v55 }
 0x1c8   :  { %v354_v56 = vpop.f32.mrf.mxu1  ;;  %1594 = vmatpush3.xpose.msk.msra.mxu1 %vm165_vm2, %v1575_v55 }
 0x1c9   :  { %1595 = vmatprep.subr.msk.mxu1 %vm165_vm2, %v354_v56 }
 0x1ca   :  { %v1578_v57 = vpop.f32.mrf.mxu1 }
 0x1cc   :  { %v364_v58 = vpop.f32.mrf.mxu1  ;;  %1596 = vmatpush3.xpose.msk.msra.mxu1 %vm165_vm2, %v354_v56 }
 0x1ce   :  { %v1589_v59 = vpop.f32.mrf.mxu1 }
 0x1cf   :  { %1598 = vmatmul.mubr.msk.f32.vlgmr.msra.gmra.mxu1 %vm165_vm2, %v1561_v51  ;;  %1600 = vmatprep.subr.mxu1 %v1589_v59  ;;  %v849_v51 = vld [vmem:[%s2250_s7 + $0x10] sm:$0xff] }
 0x1d0   :  { %v443_v60 = vpop.f32.mrf.mxu1  ;;  %1601 = vmatpush3.msra.mxu1 %v1589_v59 }
 0x1d1   :  { %1602 = vmatprep.subr.mxu1 %v443_v60 }
 0x1d2   :  { %1603 = vmatpush3.msra.mxu1 %v443_v60  ;;  %v1592_v61 = vpop.f32.mrf.mxu1 }
 0x1d3   :  { %1607 = vmatprep.subr.msk.mxu1 %vm165_vm2, %v1578_v57 }
 0x1d4   :  { %v453_v62 = vpop.f32.mrf.mxu1 }
 0x28f   :  { %v1599_v63 = vpop.f32.mrf.mxu1 }
 0x290   :  { %v550_v3 = vmul.f32 0.17677669, %v1599_v63 }
 0x291   :  { %v540_v0 = vpop.f32.mrf.mxu1 }
 0x292   :  { %v549_v2 = vmul.f32 0.17677669, %v540_v0  ;;  %v555_v5 = vsel %vm551_vm6, %v550_v3, -inf }
 0x294   :  { %v552_v4 = vsel %vm551_vm6, %v549_v2, -inf }
 0x295   :  { %553 = vmax.xlane.f32.xlu0 %v552_v4 }
 0x299   :  { %556 = vmax.xlane.f32.xlu0 %v555_v5 }
 0x31e   :  { %v554_v6 = vpop.xlane.xlu0 %553 }
 0x31f   :  { %v558_v7 = vsub.f32 %v549_v2, %v554_v6 }
 0x321   :  { %v560_v8 = vmul.f32 1.442695, %v558_v7 }
 0x322   :  { %v557_v9 = vpop.xlane.xlu0 %556 }
 0x323   :  { %1701 = vpow2.f32 %v560_v8  ;;  %v559_v10 = vsub.f32 %v550_v3, %v557_v9 }
 0x325   :  { %v562_v11 = vmul.f32 1.442695, %v559_v10 }
 0x327   :  { %1703 = vpow2.f32 %v562_v11 }
 0x330   :  { %v1702_v12 = vpop.eup %1701 }
 0x331   :  { %v564_v13 = vsel %vm551_vm6, %v1702_v12, 0.0 }
 0x332   :  { %565 = vadd.xlane.f32.xlu1 %v564_v13  ;;  %v1028_v13 = vld [vmem:[%s2253_s10 + $0x8] sm:$0xff] }
 0x334   :  { %v1704_v14 = vpop.eup %1703 }
 0x335   :  { %v567_v15 = vsel %vm551_vm6, %v1704_v14, 0.0 }
 0x336   :  { %568 = vadd.xlane.f32.xlu1 %v567_v15 }
 0x3bb   :  { %v566_v16 = vpop.xlane.xlu1 %565 }
 0x3bc   :  { %1705 = vrcp.f32 %v566_v16 }
 0x3bf   :  { %v569_v17 = vpop.xlane.xlu1 %568 }
 0x3c0   :  { %1707 = vrcp.f32 %v569_v17 }
 0x3c9   :  { %v1706_v18 = vpop.eup %1705 }
 0x3ca   :  { %v571_v19 = vmul.f32 %v1706_v18, %v1702_v12 }
 0x3cc   :  { %1604 = vmatprep.mubr.msk.f32.mxu1 %vm551_vm6, %v571_v19 }
 0x3cd   :  { %v1708_v20 = vpop.eup %1707 }
 0x3ce   :  { %v573_v21 = vmul.f32 %v1708_v20, %v1704_v14  ;;  %v1027_v14 = vld [vmem:[%s2253_s10] sm:$0xff] }
 0x3d0   :  { %1605 = vmatmul.mubr.msk.f32.vlgmr.msra.gmra.mxu1 %vm551_vm6, %v573_v21 }
 0x3d1   :  { %1608 = vmatpush3.xpose.msk.msra.mxu1 %vm165_vm2, %v1578_v57  ;;  %1611 = vmatprep.mubr.msk.f32.mxu1 %vm165_vm2, %v275_v54 }
 0x3d2   :  { %1609 = vmatprep.subr.msk.mxu1 %vm165_vm2, %v364_v58 }
 0x3d5   :  { %1610 = vmatpush3.xpose.msk.msra.mxu1 %vm165_vm2, %v364_v58 }
 0x3d6   :  { %1614 = vmatprep.subr.mxu1 %v1592_v61 }
 0x3d8   :  { %1612 = vmatmul.mubr.msk.f32.vlgmr.msra.gmra.mxu1 %vm165_vm2, %v1564_v53  ;;  %v847_v53 = vld [vmem:[%s2250_s7] sm:$0xff] }
 0x3d9   :  { %1615 = vmatpush3.msra.mxu1 %v1592_v61 }
 0x3da   :  { %1616 = vmatprep.subr.mxu1 %v453_v62 }
 0x3db   :  { %1617 = vmatpush3.msra.mxu1 %v453_v62 }
 0x3dc   :  { %1621 = vmatprep.subr.mxu1 %v850_v43 }
 0x490   :  { %v1606_v22 = vpop.f32.mrf.mxu1 }
 0x492   :  { %v646_v23 = vpop.f32.mrf.mxu1 }
 0x498   :  { %v1613_v24 = vpop.f32.mrf.mxu1 }
 0x499   :  { %v743_v25 = vmul.f32 0.17677669, %v1613_v24 }
 0x49a   :  { %v733_v26 = vpop.f32.mrf.mxu1 }
 0x49b   :  { %v742_v27 = vmul.f32 0.17677669, %v733_v26  ;;  %v747_v28 = vsel %vm551_vm6, %v743_v25, -inf }
 0x49c   :  { %748 = vmax.xlane.f32.xlu1 %v747_v28 }
 0x49d   :  { %v744_v29 = vsel %vm551_vm6, %v742_v27, -inf }
 0x49e   :  { %745 = vmax.xlane.f32.xlu0 %v744_v29 }
 0x525   :  { %v749_v30 = vpop.xlane.xlu1 %748 }
 0x526   :  { %v751_v31 = vsub.f32 %v743_v25, %v749_v30 }
 0x527   :  { %v746_v32 = vpop.xlane.xlu0 %745 }
 0x528   :  { %v754_v33 = vmul.f32 1.442695, %v751_v31  ;;  %v750_v34 = vsub.f32 %v742_v27, %v746_v32 }
 0x52a   :  { %1709 = vpow2.f32 %v754_v33  ;;  %v752_v35 = vmul.f32 1.442695, %v750_v34  ;;  %v2127_v33 = vld [vmem:[%s2251_s8] ss:$0 sm:$0xff] }
 0x52c   :  { %1711 = vpow2.f32 %v752_v35 }
 0x537   :  { %v1710_v36 = vpop.eup %1709 }
 0x538   :  { %v759_v38 = vsel %vm551_vm6, %v1710_v36, 0.0 }
 0x539   :  { %v1712_v39 = vpop.eup %1711  ;;  %760 = vadd.xlane.f32.xlu1 %v759_v38  ;;  %v2133_v38 = vld [vmem:[%s2252_s9] ss:$0 sm:$0xff] }
 0x53a   :  { %v756_v40 = vsel %vm551_vm6, %v1712_v39, 0.0 }
 0x53b   :  { %757 = vadd.xlane.f32.xlu0 %v756_v40 }
 0x5c2   :  { %v761_v44 = vpop.xlane.xlu1 %760 }
 0x5c3   :  { %1713 = vrcp.f32 %v761_v44  ;;  %v1186_v44 = vld [vmem:[%s2255_s12 + $0x78] sm:$0xff] }
 0x5c4   :  { %v758_v46 = vpop.xlane.xlu0 %757  ;;  %1649 = vmatprep.subr.mxu0 %v1186_v44 }
 0x5c5   :  { %1715 = vrcp.f32 %v758_v46  ;;  %1650 = vmatpush3.msra.mxu0 %v1186_v44  ;;  %v1185_v46 = vld [vmem:[%s2255_s12 + $0x70] sm:$0xff] }
 0x5c6   :  { %1651 = vmatprep.subr.mxu0 %v1185_v46 }
 0x5c7   :  { %1652 = vmatpush3.msra.mxu0 %v1185_v46 }
 0x5d0   :  { %v1714_v47 = vpop.eup %1713 }
 0x5d1   :  { %v765_v50 = vmul.f32 %v1714_v47, %v1710_v36  ;;  %v1184_v47 = vld [vmem:[%s2255_s12 + $0x68] sm:$0xff] }
 0x5d2   :  { %v1716_v48 = vpop.eup %1715  ;;  %1653 = vmatprep.subr.mxu0 %v1184_v47 }
 0x5d3   :  { %v763_v49 = vmul.f32 %v1716_v48, %v1712_v39  ;;  %1654 = vmatpush3.msra.mxu0 %v1184_v47  ;;  %v1183_v48 = vld [vmem:[%s2255_s12 + $0x60] sm:$0xff] }
 0x5d4   :  { %1655 = vmatprep.subr.mxu0 %v1183_v48 }
 0x5d5   :  { %1618 = vmatprep.mubr.msk.f32.mxu1 %vm551_vm6, %v763_v49  ;;  %1656 = vmatpush3.msra.mxu0 %v1183_v48  ;;  %v1182_v49 = vld [vmem:[%s2255_s12 + $0x58] sm:$0xff] }
 0x5d6   :  { %1619 = vmatmul.mubr.msk.f32.vlgmr.msra.gmra.mxu1 %vm551_vm6, %v765_v50  ;;  %1657 = vmatprep.subr.mxu0 %v1182_v49  ;;  %v1181_v50 = vld [vmem:[%s2255_s12 + $0x50] sm:$0xff] }
 0x5d7   :  { %1622 = vmatpush3.msra.mxu1 %v850_v43  ;;  %1629 = vmatprep.mubr.msk.f32.mxu1 %vm165_vm2, %v646_v23 }
 0x5d8   :  { %1623 = vmatprep.subr.mxu1 %v849_v51  ;;  %1658 = vmatpush3.msra.mxu0 %v1182_v49 }
 0x5d9   :  { %1624 = vmatpush3.msra.mxu1 %v849_v51  ;;  %1659 = vmatprep.subr.mxu0 %v1181_v50  ;;  %v1180_v51 = vld [vmem:[%s2255_s12 + $0x48] sm:$0xff] }
 0x5da   :  { %1625 = vmatprep.subr.mxu1 %v848_v52  ;;  %1660 = vmatpush3.msra.mxu0 %v1181_v50 }
 0x5db   :  { %1626 = vmatpush3.msra.mxu1 %v848_v52  ;;  %v1179_v52 = vld [vmem:[%s2255_s12 + $0x40] sm:$0xff]  ;;  %1661 = vmatprep.subr.mxu0 %v1180_v51 }
 0x5dc   :  { %1627 = vmatprep.subr.mxu1 %v847_v53  ;;  %1662 = vmatpush3.msra.mxu0 %v1180_v51 }
 0x5dd   :  { %1628 = vmatpush3.msra.mxu1 %v847_v53  ;;  %v1178_v53 = vld [vmem:[%s2255_s12 + $0x38] sm:$0xff]  ;;  %1663 = vmatprep.subr.mxu0 %v1179_v52 }
 0x5de   :  { %1630 = vmatmul.mubr.msk.f32.vlgmr.msra.gmra.mxu1 %vm165_vm2, %v1606_v22  ;;  %1664 = vmatpush3.msra.mxu0 %v1179_v52 }
 0x5df   :  { %1665 = vmatprep.subr.mxu0 %v1178_v53 }
 0x5e0   :  { %1666 = vmatpush3.msra.mxu0 %v1178_v53 }
 0x696   :  { %v1620_v54 = vpop.f32.mrf.mxu1 }
 0x698   :  { %v838_v55 = vpop.f32.mrf.mxu1 }
 0x699   :  { %1632 = vmatprep.mubr.msk.f32.mxu1 %vm165_vm2, %v838_v55  ;;  %v1176_v55 = vld [vmem:[%s2255_s12 + $0x28] sm:$0xff] }
 0x69a   :  { %1633 = vmatmul.mubr.msk.f32.gmra.mxu1 %vm165_vm2, %v1620_v54  ;;  %v1177_v54 = vld [vmem:[%s2255_s12 + $0x30] sm:$0xff] }
 0x69b   :  { %1667 = vmatprep.subr.mxu0 %v1177_v54 }
 0x69c   :  { %1668 = vmatpush3.msra.mxu0 %v1177_v54 }
 0x69d   :  { %1669 = vmatprep.subr.mxu0 %v1176_v55 }
 0x69e   :  { %v1631_v56 = vpop.f32.mrf.mxu1  ;;  %1670 = vmatpush3.msra.mxu0 %v1176_v55 }
 0x69f   :  { %v949_v57 = vadd.f32 %v1631_v56, %v2004_v42  ;;  %v1175_v56 = vld [vmem:[%s2255_s12 + $0x20] sm:$0xff] }
 0x6a0   :  { %v929_v58 = vpop.f32.mrf.mxu1  ;;  %1671 = vmatprep.subr.mxu0 %v1175_v56 }
 0x6a1   :  { %v948_v59 = vadd.f32 %v929_v58, %v1995_v37  ;;  %v957_v60 = vsel %vm165_vm2, %v949_v57, 0.0  ;;  %1672 = vmatpush3.msra.mxu0 %v1175_v56  ;;  %v1173_v58 = vld [vmem:[%s2255_s12 + $0x10] sm:$0xff] }
 0x6a2   :  { %958 = vadd.xlane.f32.xlu1 %v957_v60  ;;  %v1171_v60 = vld [vmem:[%s2255_s12] sm:$0xff] }
 0x6a3   :  { %v954_v61 = vsel %vm165_vm2, %v948_v59, 0.0 }
 0x6a4   :  { %955 = vadd.xlane.f32.xlu0 %v954_v61 }
 0x72b   :  { %v959_v62 = vpop.xlane.xlu1 %958 }
 0x72c   :  { %v968_v0 = vmul.f32 0.03125, %v959_v62 }
 0x72d   :  { %v956_v63 = vpop.xlane.xlu0 %955 }
 0x72e   :  { %v967_v2 = vmul.f32 0.03125, %v956_v63  ;;  %v972_v3 = vsub.f32 %v949_v57, %v968_v0  ;;  %v1174_v57 = vld [vmem:[%s2255_s12 + $0x18] sm:$0xff] }
 0x72f   :  { %1673 = vmatprep.subr.mxu0 %v1174_v57 }
 0x730   :  { %v971_v5 = vsub.f32 %v948_v59, %v967_v2  ;;  %v976_v8 = vmul.f32 %v972_v3, %v972_v3  ;;  %1674 = vmatpush3.msra.mxu0 %v1174_v57  ;;  %v1172_v59 = vld [vmem:[%s2255_s12 + $0x8] sm:$0xff] }
 0x731   :  { %1675 = vmatprep.subr.mxu0 %v1173_v58 }
 0x732   :  { %v975_v10 = vmul.f32 %v971_v5, %v971_v5  ;;  %v982_v11 = vsel %vm165_vm2, %v976_v8, 0.0  ;;  %1676 = vmatpush3.msra.mxu0 %v1173_v58 }
 0x733   :  { %1677 = vmatprep.subr.mxu0 %v1172_v59 }
 0x734   :  { %v979_v12 = vsel %vm165_vm2, %v975_v10, 0.0  ;;  %1678 = vmatpush3.msra.mxu0 %v1172_v59  ;;  %v1460_v10 = vld [vmem:[%s2254_s11] ss:$0 sm:$0xff] }
 0x735   :  { %1679 = vmatprep.subr.mxu0 %v1171_v60  ;;  %v1465_v59 = vld [vmem:[%s2256_s13] ss:$0 sm:$0xff] }
 0x736   :  { %1680 = vmatpush3.msra.mxu0 %v1171_v60 }
 0x75a   :  { %v1634_v4 = vpop.f32.mrf.mxu1 }
 0x75b   :  { %v951_v6 = vadd.f32 %v1634_v4, %v2016_v45  ;;  %v1030_v45 = vld [vmem:[%s2253_s10 + $0x18] sm:$0xff] }
 0x75c   :  { %v939_v7 = vpop.f32.mrf.mxu1  ;;  %1635 = vmatprep.subr.mxu1 %v1030_v45 }
 0x75d   :  { %v950_v42 = vadd.f32 %v939_v7, %v2002_v41  ;;  %v963_v37 = vsel %vm165_vm2, %v951_v6, 0.0  ;;  %v1029_v41 = vld [vmem:[%s2253_s10 + $0x10] sm:$0xff]  ;;  %1636 = vmatpush3.msra.mxu1 %v1030_v45 }
 0x75e   :  { %964 = vadd.xlane.f32.xlu1 %v963_v37  ;;  %1637 = vmatprep.subr.mxu1 %v1029_v41 }
 0x75f   :  { %v960_v9 = vsel %vm165_vm2, %v950_v42, 0.0  ;;  %1638 = vmatpush3.msra.mxu1 %v1029_v41 }
 0x760   :  { %961 = vadd.xlane.f32.xlu0 %v960_v9  ;;  %1639 = vmatprep.subr.mxu1 %v1028_v13 }
 0x761   :  { %1640 = vmatpush3.msra.mxu1 %v1028_v13 }
 0x762   :  { %983 = vadd.xlane.f32.xlu1 %v982_v11  ;;  %1641 = vmatprep.subr.mxu1 %v1027_v14 }
 0x763   :  { %1642 = vmatpush3.msra.mxu1 %v1027_v14 }
 0x764   :  { %980 = vadd.xlane.f32.xlu0 %v979_v12  ;;  %1687 = vmatprep.subr.mxu1 %v1761_v1 }
 0x7e7   :  { %v965_v15 = vpop.xlane.xlu1 %964 }
 0x7e8   :  { %v970_v16 = vmul.f32 0.03125, %v965_v15 }
 0x7e9   :  { %v962_v17 = vpop.xlane.xlu0 %961 }
 0x7ea   :  { %v2114_v18 = vsub.f32 %v951_v6, %v970_v16  ;;  %v969_v19 = vmul.f32 0.03125, %v962_v17 }
 0x7eb   :  { %v984_v20 = vpop.xlane.xlu1 %983 }
 0x7ec   :  { %v2116_v21 = vsub.f32 %v950_v42, %v969_v19  ;;  %v992_v22 = vmul.f32 0.03125, %v984_v20  ;;  %v978_v23 = vmul.f32 %v2114_v18, %v2114_v18 }
 0x7ed   :  { %v981_v24 = vpop.xlane.xlu0 %980 }
 0x7ee   :  { %v996_v25 = vadd.f32 1e-05, %v992_v22  ;;  %v991_v26 = vmul.f32 0.03125, %v981_v24  ;;  %v988_v27 = vsel %vm165_vm2, %v978_v23, 0.0  ;;  %v977_v28 = vmul.f32 %v2116_v21, %v2116_v21 }
 0x7ef   :  { %989 = vadd.xlane.f32.xlu1 %v988_v27 }
 0x7f0   :  { %1717 = vrsqrt.f32 %v996_v25  ;;  %v995_v29 = vadd.f32 1e-05, %v991_v26  ;;  %v985_v30 = vsel %vm165_vm2, %v977_v28, 0.0 }
 0x7f1   :  { %986 = vadd.xlane.f32.xlu0 %v985_v30 }
 0x7f2   :  { %1719 = vrsqrt.f32 %v995_v29 }
 0x7fd   :  { %v1718_v31 = vpop.eup %1717 }
 0x7fe   :  { %v1004_v32 = vmul.f32 %v1718_v31, %v972_v3 }
 0x7ff   :  { %v1720_v34 = vpop.eup %1719 }
 0x800   :  { %v1003_v35 = vmul.f32 %v1720_v34, %v971_v5  ;;  %v1014_v36 = vmul.f32 %v2127_v33, %v1004_v32 }
 0x802   :  { %v1013_v39 = vmul.f32 %v2127_v33, %v1003_v35  ;;  %v1024_v43 = vadd.f32 %v2133_v38, %v1014_v36 }
 0x804   :  { %v2137_v40 = vadd.f32 %v2133_v38, %v1013_v39 }
 0x806   :  { %1643 = vmatprep.mubr.msk.f32.mxu1 %vm165_vm2, %v2137_v40 }
 0x807   :  { %1644 = vmatmul.mubr.msk.f32.vlgmr.msra.gmra.mxu1 %vm165_vm2, %v1024_v43 }
 0x878   :  { %v990_v61 = vpop.xlane.xlu1 %989 }
 0x879   :  { %v994_v62 = vmul.f32 0.03125, %v990_v61 }
 0x87a   :  { %v987_v63 = vpop.xlane.xlu0 %986 }
 0x87b   :  { %v998_v0 = vadd.f32 1e-05, %v994_v62  ;;  %v993_v2 = vmul.f32 0.03125, %v987_v63 }
 0x87d   :  { %1721 = vrsqrt.f32 %v998_v0  ;;  %v997_v3 = vadd.f32 1e-05, %v993_v2 }
 0x87f   :  { %1723 = vrsqrt.f32 %v997_v3 }
 0x88a   :  { %v1722_v4 = vpop.eup %1721 }
 0x88b   :  { %v1006_v5 = vmul.f32 %v1722_v4, %v2114_v18 }
 0x88c   :  { %v1724_v6 = vpop.eup %1723 }
 0x88d   :  { %v1005_v7 = vmul.f32 %v1724_v6, %v2116_v21  ;;  %v1016_v42 = vmul.f32 %v2127_v33, %v1006_v5 }
 0x88f   :  { %v1015_v37 = vmul.f32 %v2127_v33, %v1005_v7  ;;  %v1026_v9 = vadd.f32 %v2133_v38, %v1016_v42 }
 0x891   :  { %v2196_v8 = vadd.f32 %v2133_v38, %v1015_v37 }
 0x893   :  { %1646 = vmatprep.mubr.msk.f32.mxu1 %vm165_vm2, %v2196_v8 }
 0x894   :  { %1647 = vmatmul.mubr.msk.f32.gmra.mxu1 %vm165_vm2, %v1026_v9 }
 0x895   :  { %1695 = vmatprep.mubr.msk.f32.mxu1 %vm1762_vm7, %v1761_v1 }
 0x8c7   :  { %v1645_v11 = vpop.f32.mrf.mxu1 }
 0x8c8   :  { %v1122_v12 = vadd.f32 %v1645_v11, %v1460_v10 }
 0x8c9   :  { %v1116_v45 = vpop.f32.mrf.mxu1 }
 0x8ca   :  { %v1136_v41 = vmul.f32 %v1122_v12, %v1122_v12  ;;  %v1117_v13 = vadd.f32 %v1460_v10, %v1116_v45 }
 0x8cc   :  { %v1140_v14 = vmul.f32 %v1136_v41, %v1122_v12  ;;  %v1135_v15 = vmul.f32 %v1117_v13, %v1117_v13  ;;  %v1331_v41 = vld [vmem:[%s2259_s16 + $0x18] sm:$0xff] }
 0x8cd   :  { %1688 = vmatpush3.msra.mxu1 %v1331_v41 }
 0x8ce   :  { %v1144_v16 = vmul.f32 0.044715, %v1140_v14  ;;  %v1139_v17 = vmul.f32 %v1135_v15, %v1117_v13  ;;  %1689 = vmatprep.subr.mxu1 %v1761_v1  ;;  %v1328_v14 = vld [vmem:[%s2259_s16] sm:$0xff] }
 0x8d0   :  { %v1148_v18 = vadd.f32 %v1144_v16, %v1122_v12  ;;  %v1143_v19 = vmul.f32 0.044715, %v1139_v17 }
 0x8d2   :  { %v1152_v20 = vmul.f32 0.7978846, %v1148_v18  ;;  %v1147_v21 = vadd.f32 %v1143_v19, %v1117_v13 }
 0x8d4   :  { %1725 = vtanh.f32 %v1152_v20  ;;  %v1151_v22 = vmul.f32 0.7978846, %v1147_v21 }
 0x8d6   :  { %1727 = vtanh.f32 %v1151_v22 }
 0x8e1   :  { %v1726_v23 = vpop.eup %1725 }
 0x8e2   :  { %v1160_v24 = vadd.f32 1.0, %v1726_v23 }
 0x8e3   :  { %v1728_v25 = vpop.eup %1727 }
 0x8e4   :  { %v1159_v26 = vadd.f32 1.0, %v1728_v25  ;;  %v1164_v27 = vmul.f32 0.5, %v1160_v24  ;;  %v1466_v24 = vld [vmem:[%s2257_s14] ss:$0 sm:$0xff]  ;;  %s1763_s14 = smov [#allocation3]  }
 0x8e5   :  { %s1421_s8 = sshll.u32 %s1763_s14, 4  ;;  %s1422_s8 = int_to_ptr.vmem [resolvable:$true] %s1421_s8 }
 0x8e6   :  { %v1163_v28 = vmul.f32 0.5, %v1159_v26  ;;  %v1168_v30 = vmul.f32 %v1164_v27, %v1122_v12  ;;  %p1744_p1 = scmp.lt.s32.totalorder %s1422_s8, %s1422_s8 }
 0x8e8   :  { %v1167_v29 = vmul.f32 %v1163_v28, %v1117_v13  ;;  %v1329_v13 = vld [vmem:[%s2259_s16 + $0x8] sm:$0xff] }
 0x8ea   :  { %1681 = vmatprep.mubr.f32.mxu0 %v1167_v29 }
 0x8eb   :  { %1682 = vmatmul.mubr.f32.vlgmr.msra.gmra.mxu0 %v1168_v30 }
 0x954   :  { %v1648_v31 = vpop.f32.mrf.mxu1 }
 0x955   :  { %v1132_v32 = vadd.f32 %v1648_v31, %v1460_v10 }
 0x956   :  { %v1126_v33 = vpop.f32.mrf.mxu1 }
 0x957   :  { %v1138_v34 = vmul.f32 %v1132_v32, %v1132_v32  ;;  %v1127_v35 = vadd.f32 %v1460_v10, %v1126_v33 }
 0x959   :  { %v1142_v36 = vmul.f32 %v1138_v34, %v1132_v32  ;;  %v1137_v38 = vmul.f32 %v1127_v35, %v1127_v35 }
 0x95b   :  { %v1146_v39 = vmul.f32 0.044715, %v1142_v36  ;;  %v1141_v43 = vmul.f32 %v1137_v38, %v1127_v35 }
 0x95d   :  { %v1150_v44 = vadd.f32 %v1146_v39, %v1132_v32  ;;  %v1145_v46 = vmul.f32 0.044715, %v1141_v43 }
 0x95f   :  { %v1154_v47 = vmul.f32 0.7978846, %v1150_v44  ;;  %v1149_v48 = vadd.f32 %v1145_v46, %v1127_v35 }
 0x961   :  { %1729 = vtanh.f32 %v1154_v47  ;;  %v1153_v49 = vmul.f32 0.7978846, %v1149_v48 }
 0x963   :  { %1731 = vtanh.f32 %v1153_v49 }
 0x96e   :  { %v1730_v50 = vpop.eup %1729 }
 0x96f   :  { %v1162_v51 = vadd.f32 1.0, %v1730_v50 }
 0x970   :  { %v1732_v52 = vpop.eup %1731 }
 0x971   :  { %v1161_v53 = vadd.f32 1.0, %v1732_v52  ;;  %v1166_v54 = vmul.f32 0.5, %v1162_v51 }
 0x973   :  { %v1165_v55 = vmul.f32 0.5, %v1161_v53  ;;  %v1170_v57 = vmul.f32 %v1166_v54, %v1132_v32  ;;  %v1468_v32 = vld [vmem:[%s2260_s17] ss:$0 sm:$0xff] }
 0x975   :  { %v1169_v56 = vmul.f32 %v1165_v55, %v1127_v35 }
 0x977   :  { %1684 = vmatprep.mubr.f32.mxu0 %v1169_v56 }
 0x978   :  { %1685 = vmatmul.mubr.f32.gmra.mxu0 %v1170_v57 }
 0x9ab   :  { %v1683_v58 = vpop.f32.mrf.mxu0 }
 0x9ad   :  { %v1260_v60 = vpop.f32.mrf.mxu0 }
 0x9ae   :  { %v1261_v61 = vadd.f32 %v1465_v59, %v1260_v60 }
 0x9b0   :  { %v1277_v62 = vadd.f32 %v1261_v61, %v2137_v40 }
 0x9b2   :  { %v1281_v63 = vsel %vm165_vm2, %v1277_v62, 0.0 }
 0x9b3   :  { %1282 = vadd.xlane.f32.xlu1 %v1281_v63 }
 0xa38   :  { %v1686_v0 = vpop.f32.mrf.mxu0 }
 0xa3a   :  { %v1269_v2 = vpop.f32.mrf.mxu0 }
 0xa3b   :  { %v1270_v3 = vadd.f32 %v1465_v59, %v1269_v2 }
 0xa3c   :  { %v1283_v4 = vpop.xlane.xlu1 %1282 }
 0xa3d   :  { %v1287_v5 = vmul.f32 0.03125, %v1283_v4  ;;  %v1278_v6 = vadd.f32 %v1270_v3, %v2196_v8  ;;  %v1330_v8 = vld [vmem:[%s2259_s16 + $0x10] sm:$0xff] }
 0xa3e   :  { %1690 = vmatpush3.msra.mxu1 %v1330_v8 }
 0xa3f   :  { %v1289_v7 = vsub.f32 %v1277_v62, %v1287_v5  ;;  %v1284_v42 = vsel %vm165_vm2, %v1278_v6, 0.0  ;;  %1691 = vmatprep.subr.mxu1 %v1761_v1 }
 0xa40   :  { %1285 = vadd.xlane.f32.xlu0 %v1284_v42  ;;  %1692 = vmatpush3.msra.mxu1 %v1329_v13 }
 0xa41   :  { %v1291_v37 = vmul.f32 %v1289_v7, %v1289_v7  ;;  %1693 = vmatprep.subr.mxu1 %v1761_v1  ;;  %v1467_v1 = vld [vmem:[%s2258_s15] ss:$0 sm:$0xff]  ;;  %s1739_s15 = scalar_lea.vmem %s1422_s8, 32 }
 0xa42   :  { %1694 = vmatpush3.msra.mxu1 %v1328_v14  ;;  %p1740_p0 = scmp.ne.s32.totalorder %s1422_s8, %s1739_s15  ;;  %p1745_p2 = scmp.lt.s32.totalorder %s1739_s15, %s1739_s15 }
 0xa43   :  { %v1293_v9 = vsel %vm165_vm2, %v1291_v37, 0.0 }
 0xa44   :  { %1294 = vadd.xlane.f32.xlu1 %v1293_v9  ;;  %p1746_p3 = por %p1745_p2, %p1744_p1 }
 0xa46   :  { %p1747_p4 = pnand %p1746_p3, %p1740_p0 }
 0xac9   :  { %v1286_v10 = vpop.xlane.xlu0 %1285 }
 0xaca   :  { %v1288_v40 = vmul.f32 0.03125, %v1286_v10 }
 0xacc   :  { %v1290_v11 = vsub.f32 %v1278_v6, %v1288_v40 }
 0xacd   :  { %v1295_v15 = vpop.xlane.xlu1 %1294 }
 0xace   :  { %v1292_v12 = vmul.f32 %v1290_v11, %v1290_v11  ;;  %v1299_v16 = vmul.f32 0.03125, %v1295_v15 }
 0xad0   :  { %v1296_v45 = vsel %vm165_vm2, %v1292_v12, 0.0  ;;  %v1301_v17 = vadd.f32 1e-05, %v1299_v16 }
 0xad1   :  { %1297 = vadd.xlane.f32.xlu0 %v1296_v45 }
 0xad2   :  { %1733 = vrsqrt.f32 %v1301_v17 }
 0xadf   :  { %v1734_v21 = vpop.eup %1733 }
 0xae0   :  { %v1305_v22 = vmul.f32 %v1734_v21, %v1289_v7 }
 0xae2   :  { %v1313_v26 = vmul.f32 %v1466_v24, %v1305_v22 }
 0xae4   :  { %v1321_v29 = vadd.f32 %v1467_v1, %v1313_v26 }
 0xb5a   :  { %v1298_v18 = vpop.xlane.xlu0 %1297 }
 0xb5b   :  { %v1300_v19 = vmul.f32 0.03125, %v1298_v18 }
 0xb5d   :  { %v1302_v20 = vadd.f32 1e-05, %v1300_v19 }
 0xb5f   :  { %1735 = vrsqrt.f32 %v1302_v20 }
 0xb6c   :  { %v1736_v23 = vpop.eup %1735 }
 0xb6d   :  { %v1306_v25 = vmul.f32 %v1736_v23, %v1290_v11 }
 0xb6f   :  { %v1314_v27 = vmul.f32 %v1466_v24, %v1306_v25 }
 0xb71   :  { %v1322_v28 = vadd.f32 %v1467_v1, %v1314_v27 }
 0xb73   :  { %v1324_v30 = vrot.slane %v1322_v28, 7 }
 0xb75   :  { %v1327_v31 = vsel %vm1326_vm8, %v1321_v29, %v1324_v30 }
 0xb76   :  { %1696 = vmatmul.mubr.msk.f32.vlgmr.msra.gmra.mxu1 %vm165_vm2, %v1327_v31 }
 0xc36   :  { %v1408_v33 = vpop.f32.mrf.mxu1 }
 0xc37   :  { %v1409_v34 = vadd.f32 %v1468_v32, %v1408_v33 }
 0xc38   :  { %v1697_v35 = vpop.f32.mrf.mxu1 }
 0xc39   :  { %1737 = vtanh.f32 %v1409_v34 }
 0xc46   :  { %v1738_v36 = vpop.eup %1737 }
 0xc47   :  { %1414 = vst.msk [vmem:[#allocation3] sm:$0x3] %vm1413_vm9, %v1738_v36 }
 0xc48   :  { %1750 = shalt.err (!%p1747_p4)
}
 0xc49   :  { %1424 = dma.vmem_to_hbm [thread:$0]  %s1422_s8, 32, %s2261_s18, [#allocation4]  }
 0xc4a   :  { %1759 = dma.done.wait [#allocation4], 32  }
 0xc4b   :  { %1760 = vsyncadd [#allocation4], 4294967264 }
 0xc4c   :  { %1428 = vsyncpa [#allocation4], 1 }

</bundles_post_ra>
